<compile_context>
chip_gen: v7x
topology: tpu7x:2x2x1
jax: 0.10.0
libtpu: 0.0.40
codegen_flags: <defaults>
</compile_context>

<pallas_src>
import functools
import math

import jax
import jax.numpy as jnp
from jax.experimental import pallas as pl
from jax.experimental.pallas import tpu as pltpu


def _round_up(x, m):
    return ((x + m - 1) // m) * m


def _pick_tile(n_pad, cap=512):
    """Largest power-of-two tile <= cap that divides n_pad (n_pad % 128 == 0)."""
    t = cap
    while t > 128 and n_pad % t != 0:
        t //= 2
    return min(t, n_pad)


def _make_kernel(swap_assoc, has_bias, mxu_dtype):
    def kernel(*refs):
        if has_bias:
            adj_ref, x_ref, w_ref, b_ref, o_ref, acc_ref = refs
        else:
            adj_ref, x_ref, w_ref, o_ref, acc_ref = refs
            b_ref = None

        k = pl.program_id(2)

        @pl.when(k == 0)
        def _init():
            acc_ref[...] = jnp.zeros_like(acc_ref)

        if swap_assoc:
            # Fin <= Fout: accumulate (adj @ x) in [TM, Fin_pad] f32; multiply
            # by W once in the finalize step.
            acc_ref[...] += jnp.dot(
                adj_ref[...].astype(mxu_dtype),
                x_ref[...].astype(mxu_dtype),
                preferred_element_type=jnp.float32,
            )
        else:
            # Fin > Fout: support_tile = x_tile @ W, accumulate adj @ support.
            # TODO(synk): for Fin >> Fout and very large N, a two-stage kernel
            # would avoid recomputing x_tile @ W per row-tile.
            sup = jnp.dot(
                x_ref[...].astype(mxu_dtype),
                w_ref[...].astype(mxu_dtype),
                preferred_element_type=jnp.float32,
            )
            acc_ref[...] += jnp.dot(
                adj_ref[...].astype(mxu_dtype),
                sup.astype(mxu_dtype),
                preferred_element_type=jnp.float32,
            )

        @pl.when(k == pl.num_programs(2) - 1)
        def _finalize():
            if swap_assoc:
                out = jnp.dot(
                    acc_ref[...].astype(mxu_dtype),
                    w_ref[...].astype(mxu_dtype),
                    preferred_element_type=jnp.float32,
                )
            else:
                out = acc_ref[...]
            if b_ref is not None:
                out = out + b_ref[...]  # (1, Fout_pad) broadcast, once per tile
            o_ref[...] = out.astype(o_ref.dtype)

    return kernel


@functools.partial(jax.jit, static_argnames=("mxu_dtype",))
def graph_convolution(x, adj, weight, bias=None, *, mxu_dtype=None):
    """Pallas GraphConvolution forward.

    x:      [B, N, Fin]
    adj:    [B, N, N]
    weight: [Fin, Fout]
    bias:   [1, 1, Fout] or None
    mxu_dtype: optional dtype for MXU operands (e.g. jnp.bfloat16 on v6e/v7x);
               accumulation is always f32.  Default: input dtype.
    returns [B, N, Fout]
    """
    B, N, Fin = x.shape
    Fin_w, Fout = weight.shape
    assert Fin_w == Fin
    if mxu_dtype is None:
        mxu_dtype = x.dtype
    out_dtype = x.dtype

    # ---- padding: lane-dense features, (8,128)-aligned node tiles ----------
    N_pad = _round_up(N, 128)
    Fin_pad = _round_up(Fin, 128)
    Fout_pad = _round_up(Fout, 128)

    x_p = jnp.pad(x, ((0, 0), (0, N_pad - N), (0, Fin_pad - Fin)))
    adj_p = jnp.pad(adj, ((0, 0), (0, N_pad - N), (0, N_pad - N)))
    w_p = jnp.pad(weight, ((0, Fin_pad - Fin), (0, Fout_pad - Fout)))
    if bias is not None:
        b_p = jnp.pad(bias.reshape(1, Fout), ((0, 0), (0, Fout_pad - Fout)))

    # ---- tiling -------------------------------------------------------------
    TM = _pick_tile(N_pad)
    TK = _pick_tile(N_pad)
    grid = (B, N_pad // TM, N_pad // TK)

    swap_assoc = Fin <= Fout              # (adj @ x) @ W  vs  adj @ (x @ W)
    Facc = Fin_pad if swap_assoc else Fout_pad

    adj_spec = pl.BlockSpec((None, TM, TK), lambda b, m, k: (b, m, k))
    x_spec = pl.BlockSpec((None, TK, Fin_pad), lambda b, m, k: (b, k, 0))
    w_spec = pl.BlockSpec((Fin_pad, Fout_pad), lambda b, m, k: (0, 0))  # resident
    o_spec = pl.BlockSpec((None, TM, Fout_pad), lambda b, m, k: (b, m, 0))

    in_specs = [adj_spec, x_spec, w_spec]
    operands = [adj_p, x_p, w_p]
    if bias is not None:
        in_specs.append(pl.BlockSpec((1, Fout_pad), lambda b, m, k: (0, 0)))
        operands.append(b_p)

    # ---- explicit VMEM budget (v7x: 64 MiB/TC physical) ---------------------
    est = (
        2 * TM * TK * adj_p.dtype.itemsize            # adj tile, double-buffered
        + 2 * TK * Fin_pad * x_p.dtype.itemsize       # x tile, double-buffered
        + Fin_pad * Fout_pad * w_p.dtype.itemsize     # resident weight
        + 2 * TM * Fout_pad * jnp.dtype(out_dtype).itemsize  # out tile
        + TM * Facc * 4                               # f32 accumulator
        + Fout_pad * 4                                # bias
    )
    vmem_limit = int(min(48 * 2**20, max(32 * 2**20, 2 * est)))

    kernel = _make_kernel(swap_assoc, bias is not None, mxu_dtype)

    out_p = pl.pallas_call(
        kernel,
        out_shape=jax.ShapeDtypeStruct((B, N_pad, Fout_pad), out_dtype),
        grid_spec=pltpu.PrefetchScalarGridSpec(
            num_scalar_prefetch=0,
            grid=grid,
            in_specs=in_specs,
            out_specs=o_spec,
            scratch_shapes=[pltpu.VMEM((TM, Facc), jnp.float32)],
        ),
        compiler_params=pltpu.CompilerParams(
            dimension_semantics=("parallel", "parallel", "arbitrary"),
            vmem_limit_bytes=vmem_limit,
        ),
    )(*operands)

    return out_p[:, :N, :Fout]


def init_params(key, in_features, out_features, bias=False, dtype=jnp.float32):
    """Deterministic init mirroring reset_parameters(): uniform(-stdv, stdv)."""
    stdv = 1.0 / math.sqrt(out_features)
    kw, kb = jax.random.split(key)
    weight = jax.random.uniform(
        kw, (in_features, out_features), dtype=dtype, minval=-stdv, maxval=stdv
    )
    if bias:
        b = jax.random.uniform(
            kb, (1, 1, out_features), dtype=dtype, minval=-stdv, maxval=stdv
        )
    else:
        b = None
    return weight, b


def _reference(x, adj, w, b):
    support = jnp.einsum("bnf,fo->bno", x, w, precision=jax.lax.Precision.HIGHEST)
    out = jnp.einsum("bnm,bmo->bno", adj, support, precision=jax.lax.Precision.HIGHEST)
    return out if b is None else out + b


if __name__ == "__main__":
    key = jax.random.PRNGKey(0)
    k_x, k_adj, k_p, k_x2, k_adj2, k_p2 = jax.random.split(key, 6)

    # --- small shapes implied by the module (default bias=False) ------------
    B, N, Fin, Fout = 2, 16, 32, 64
    x = jax.random.normal(k_x, (B, N, Fin), dtype=jnp.float32)
    adj = jax.random.normal(k_adj, (B, N, N), dtype=jnp.float32)

    w_nb, _ = init_params(k_p, Fin, Fout, bias=False)
    out_nb = jax.block_until_ready(graph_convolution(x, adj, w_nb, None))
    assert out_nb.shape == (B, N, Fout)
    assert jnp.allclose(out_nb, _reference(x, adj, w_nb, None), atol=1e-4, rtol=1e-4)

    w_b, b_b = init_params(k_p, Fin, Fout, bias=True)
    out_b = jax.block_until_ready(graph_convolution(x, adj, w_b, b_b))
    assert jnp.allclose(out_b, _reference(x, adj, w_b, b_b), atol=1e-4, rtol=1e-4)

    # --- larger shape exercising multi-tile accumulation and the Fin>Fout path
    B2, N2, Fin2, Fout2 = 2, 384, 96, 40   # N_pad=384 -> 3x3 (m,k) tiles of 128
    x2 = jax.random.normal(k_x2, (B2, N2, Fin2), dtype=jnp.float32)
    adj2 = jax.random.normal(k_adj2, (B2, N2, N2), dtype=jnp.float32)
    w2, b2 = init_params(k_p2, Fin2, Fout2, bias=True)
    out2 = jax.block_until_ready(graph_convolution(x2, adj2, w2, b2))
    assert out2.shape == (B2, N2, Fout2)
    assert jnp.allclose(out2, _reference(x2, adj2, w2, b2), atol=1e-3, rtol=1e-3)

    print("KERNEL_OK")
</pallas_src>

<mosaic_0001>
module attributes {stable_mosaic.version = 11 : i64} {
  func.func @kernel(%arg0: i32, %arg1: i32, %arg2: i32, %arg3: memref<1x128x128xf32, #tpu.memory_space<vmem>>, %arg4: memref<1x128x128xf32, #tpu.memory_space<vmem>>, %arg5: memref<128x128xf32, #tpu.memory_space<vmem>>, %arg6: memref<1x128x128xf32, #tpu.memory_space<vmem>>, %arg7: memref<128x128xf32, #tpu.memory_space<vmem>>) attributes {dimension_semantics = [#tpu.dimension_semantics<parallel>, #tpu.dimension_semantics<parallel>, #tpu.dimension_semantics<arbitrary>], iteration_bounds = array<i64: 2, 1, 1>, scalar_prefetch = 0 : i64, scratch_operands = 1 : i64, tpu.core_type = #tpu.core_type<tc>, window_params = [{transform_indices = @transform_0, window_bounds = array<i64: 1, 128, 128>}, {transform_indices = @transform_1, window_bounds = array<i64: 1, 128, 128>}, {pipeline_mode = #tpu.pipeline_mode<synchronous>, transform_indices = @transform_2, window_bounds = array<i64: 128, 128>}, {transform_indices = @transform_3, window_bounds = array<i64: 1, 128, 128>}]} {
    %c0_i32 = arith.constant 0 : i32
    %0 = arith.cmpi eq, %arg2, %c0_i32 : i32
    %1 = arith.extui %0 : i1 to i32
    %c0_i32_0 = arith.constant 0 : i32
    %2 = arith.cmpi ne, %1, %c0_i32_0 : i32
    scf.if %2 {
      %cst_12 = arith.constant 0.000000e+00 : f32
      %14 = vector.broadcast %cst_12 : f32 to vector<128x128xf32>
      %c0_13 = arith.constant 0 : index
      %c0_14 = arith.constant 0 : index
      %15 = vector.load %arg7[%c0_13, %c0_14] : memref<128x128xf32, #tpu.memory_space<vmem>>, vector<128x128xf32>
      tpu.vector_store %arg7[%c0_13, %c0_14], %14 {strides = array<i32>} : memref<128x128xf32, #tpu.memory_space<vmem>>, vector<128x128xf32>,
    } else {
    }
    %c0 = arith.constant 0 : index
    %c0_1 = arith.constant 0 : index
    %3 = vector.load %arg7[%c0, %c0_1] : memref<128x128xf32, #tpu.memory_space<vmem>>, vector<128x128xf32>
    %c0_2 = arith.constant 0 : index
    %c0_3 = arith.constant 0 : index
    %c0_4 = arith.constant 0 : index
    %4 = vector.load %arg3[%c0_2, %c0_3, %c0_4] : memref<1x128x128xf32, #tpu.memory_space<vmem>>, vector<1x128x128xf32>
    %5 = vector.shape_cast %4 : vector<1x128x128xf32> to vector<128x128xf32>
    %c0_5 = arith.constant 0 : index
    %c0_6 = arith.constant 0 : index
    %c0_7 = arith.constant 0 : index
    %6 = vector.load %arg4[%c0_5, %c0_6, %c0_7] : memref<1x128x128xf32, #tpu.memory_space<vmem>>, vector<1x128x128xf32>
    %7 = vector.shape_cast %6 : vector<1x128x128xf32> to vector<128x128xf32>
    %cst = arith.constant dense<0.000000e+00> : vector<128x128xf32>
    %8 = tpu.matmul %5, %7, %cst {dimension_numbers = #tpu.dot_dimension_numbers<[1], [0], [0], [1], [0, 0, 1, 1], [], []>} : vector<128x128xf32>, vector<128x128xf32>, vector<128x128xf32> -> vector<128x128xf32>
    %9 = arith.addf %3, %8 : vector<128x128xf32>
    %c0_8 = arith.constant 0 : index
    %c0_9 = arith.constant 0 : index
    %10 = vector.load %arg7[%c0_8, %c0_9] : memref<128x128xf32, #tpu.memory_space<vmem>>, vector<128x128xf32>
    tpu.vector_store %arg7[%c0_8, %c0_9], %9 {strides = array<i32>} : memref<128x128xf32, #tpu.memory_space<vmem>>, vector<128x128xf32>,
    %c0_i32_10 = arith.constant 0 : i32
    %11 = arith.cmpi eq, %arg2, %c0_i32_10 : i32
    %12 = arith.extui %11 : i1 to i32
    %c0_i32_11 = arith.constant 0 : i32
    %13 = arith.cmpi ne, %12, %c0_i32_11 : i32
    scf.if %13 {
      %c0_12 = arith.constant 0 : index
      %c0_13 = arith.constant 0 : index
      %14 = vector.load %arg7[%c0_12, %c0_13] : memref<128x128xf32, #tpu.memory_space<vmem>>, vector<128x128xf32>
      %c0_14 = arith.constant 0 : index
      %c0_15 = arith.constant 0 : index
      %15 = vector.load %arg5[%c0_14, %c0_15] : memref<128x128xf32, #tpu.memory_space<vmem>>, vector<128x128xf32>
      %cst_16 = arith.constant dense<0.000000e+00> : vector<128x128xf32>
      %16 = tpu.matmul %14, %15, %cst_16 {dimension_numbers = #tpu.dot_dimension_numbers<[1], [0], [0], [1], [0, 0, 1, 1], [], []>} : vector<128x128xf32>, vector<128x128xf32>, vector<128x128xf32> -> vector<128x128xf32>
      %c0_17 = arith.constant 0 : index
      %c0_18 = arith.constant 0 : index
      %c0_19 = arith.constant 0 : index
      %17 = vector.load %arg6[%c0_17, %c0_18, %c0_19] : memref<1x128x128xf32, #tpu.memory_space<vmem>>, vector<1x128x128xf32>
      %18 = vector.shape_cast %17 : vector<1x128x128xf32> to vector<128x128xf32>
      %19 = vector.shape_cast %16 : vector<128x128xf32> to vector<1x128x128xf32>
      tpu.vector_store %arg6[%c0_17, %c0_18, %c0_19], %19 {strides = array<i32>} : memref<1x128x128xf32, #tpu.memory_space<vmem>>, vector<1x128x128xf32>,
    } else {
    }
    return
  }
  func.func @transform_0(%arg0: i32, %arg1: i32, %arg2: i32) -> (i32, i32, i32) {
    %c0_i32 = arith.constant 0 : i32
    return %arg0, %arg1, %arg2 : i32, i32, i32
  }
  func.func @transform_1(%arg0: i32, %arg1: i32, %arg2: i32) -> (i32, i32, i32) {
    %c0_i32 = arith.constant 0 : i32
    %c0_i32_0 = arith.constant 0 : i32
    return %arg0, %arg2, %c0_i32 : i32, i32, i32
  }
  func.func @transform_2(%arg0: i32, %arg1: i32, %arg2: i32) -> (i32, i32) {
    %c0_i32 = arith.constant 0 : i32
    %c0_i32_0 = arith.constant 0 : i32
    %c0_i32_1 = arith.constant 0 : i32
    return %c0_i32, %c0_i32_0 : i32, i32
  }
  func.func @transform_3(%arg0: i32, %arg1: i32, %arg2: i32) -> (i32, i32, i32) {
    %c0_i32 = arith.constant 0 : i32
    %c0_i32_0 = arith.constant 0 : i32
    return %arg0, %arg1, %c0_i32 : i32, i32, i32
  }
}

</mosaic_0001>

<bundles_post_ra>
// kernel: graph_convolution.1
= control target key start
LH: loop header
LB: loop body
LE: loop exit
PB: predicated region body
PF: predicated region fallthrough
CT: control target
= control target key end

     0   :  { %s1140_s12 = smov 0   ;;  %s1142_s13 = smov 0   ;;  %s1283_s0 = inlined_call_operand.vmem [shape: f32[2,128,128], index: 0, kind: input, shape index: {}]   ;;  %s1284_s1 = inlined_call_operand.vmem [shape: f32[2,128,128], index: 1, kind: input, shape index: {}]   ;;  %s1285_s2 = inlined_call_operand.vmem [shape: f32[128,128], index: 2, kind: input, shape index: {}]   ;;  %s1286_s3 = inlined_call_operand.vmem [shape: f32[2,128,128], index: 3, kind: output, shape index: {}]  }
   0x1   :  { %s1144_s14 = smov 0  }
   0x2 LB: > { %s32_s15 = sadd.s32 1, %s1114_s13  ;;  %p820_p0 = scmp.ge.s32.totalorder %s1118_s14, 1  ;;  %s1118_s14 = sphi %s1144_s14, %s13_s14   ;;  %s1114_s13 = sphi %s1142_s13, %s1288_s13   ;;  %s1110_s12 = sphi %s1140_s12, %s1287_s12  }
   0x3   : > { %p34_p1 = scmp.ge.s32.totalorder %s32_s15, 2  ;;  %p187_p2 = scmp.lt.s32.totalorder %s1118_s14, 3 }
   0x5   : > { %s1290_s15 = smov (%p34_p1, %s32_s15), 0  ;;  %p188_p3 = pnand %p820_p0, %p187_p2 }
   0x6   : > { %p232_p4 = scmp.lt.s32.totalorder (!%p188_p3), %s1110_s12, 1  ;;  %v528_v0 = vld [vmem:[%s1285_s2] sm:$0xff] (!%p188_p3)  ;;  %v529_v1 = vld [vmem:[%s1285_s2 + $0x8] sm:$0xff] (!%p188_p3)  ;;  %v530_v2 = vld [vmem:[%s1285_s2 + $0x10] sm:$0xff] (!%p188_p3) }
   0x7   : > { %191 = sbr.rel (%p188_p3) target bundleno = 508 (0x1fc), region = 32  ;;  %v1040_v3 = vpack.c.bf16 (!%p188_p3), %v529_v1, %v528_v0  ;;  %v531_v4 = vld [vmem:[%s1285_s2 + $0x18] sm:$0xff] (!%p188_p3)  ;;  %v532_v6 = vld [vmem:[%s1285_s2 + $0x20] sm:$0xff] (!%p188_p3)  ;;  %v533_v7 = vld [vmem:[%s1285_s2 + $0x28] sm:$0xff] (!%p188_p3) }
   0x8   : > { %v1044_v5 = vpack.c.bf16 (!%p188_p3), %v531_v4, %v530_v2  ;;  %v1048_v8 = vpack.c.bf16 (!%p188_p3), %v533_v7, %v532_v6  ;;  %v534_v9 = vld [vmem:[%s1285_s2 + $0x30] sm:$0xff] (!%p188_p3)  ;;  %v535_v10 = vld [vmem:[%s1285_s2 + $0x38] sm:$0xff] (!%p188_p3)  ;;  %v536_v20 = vld [vmem:[%s1285_s2 + $0x40] sm:$0xff] (!%p188_p3) }
   0x9   : > { %1041 = vmatprep.subr.bf16.mxu1 (!%p188_p3), %v1040_v3  ;;  %v1052_v19 = vpack.c.bf16 (!%p188_p3), %v535_v10, %v534_v9  ;;  %v537_v21 = vld [vmem:[%s1285_s2 + $0x48] sm:$0xff] (!%p188_p3)  ;;  %v538_v27 = vld [vmem:[%s1285_s2 + $0x50] sm:$0xff] (!%p188_p3)  ;;  %v539_v28 = vld [vmem:[%s1285_s2 + $0x58] sm:$0xff] (!%p188_p3) }
   0xa   : > { %1043 = vmatpush3.bf16.msra.mxu1 (!%p188_p3), %v1040_v3  ;;  %v1056_v26 = vpack.c.bf16 (!%p188_p3), %v537_v21, %v536_v20  ;;  %v1060_v32 = vpack.c.bf16 (!%p188_p3), %v539_v28, %v538_v27  ;;  %v540_v33 = vld [vmem:[%s1285_s2 + $0x60] sm:$0xff] (!%p188_p3)  ;;  %v541_v34 = vld [vmem:[%s1285_s2 + $0x68] sm:$0xff] (!%p188_p3)  ;;  %v542_v39 = vld [vmem:[%s1285_s2 + $0x70] sm:$0xff] (!%p188_p3) }
   0xb   : > { %1045 = vmatprep.subr.bf16.mxu1 (!%p188_p3), %v1044_v5  ;;  %v1064_v38 = vpack.c.bf16 (!%p188_p3), %v541_v34, %v540_v33  ;;  %v543_v40 = vld [vmem:[%s1285_s2 + $0x78] sm:$0xff] (!%p188_p3) }
   0xc   : > { %v1068_v44 = vpack.c.bf16 (!%p188_p3), %v543_v40, %v542_v39 }
   0xe   : > { %s1292_s12 = smov (!%p232_p4, %s1110_s12), 1  ;;  %1047 = vmatpush3.bf16.msra.mxu1 %v1044_v5 }
   0xf   : > { %s1176_s28 = sshll.u32 %s1292_s12, 7  ;;  %1049 = vmatprep.subr.bf16.mxu1 %v1048_v8 }
  0x10   : > { %s1182_s4 = scalar_lea.vmem %s1284_s1, %s1176_s28  ;;  %s1200_s11 = scalar_lea.vmem %s1283_s0, %s1176_s28 }
  0x11   : > { %v316_v11 = vld [vmem:[%s1182_s4] sm:$0xff]  ;;  %v317_v12 = vld [vmem:[%s1182_s4 + $0x8] sm:$0xff]  ;;  %v318_v13 = vld [vmem:[%s1182_s4 + $0x10] sm:$0xff]  ;;  %s1256_s7 = scalar_lea.vmem %s1286_s3, %s1176_s28 }
  0x12   : > { %v1008_v14 = vpack.c.bf16 %v317_v12, %v316_v11  ;;  %v319_v15 = vld [vmem:[%s1182_s4 + $0x18] sm:$0xff]  ;;  %v320_v17 = vld [vmem:[%s1182_s4 + $0x20] sm:$0xff]  ;;  %v321_v18 = vld [vmem:[%s1182_s4 + $0x28] sm:$0xff]  ;;  %1051 = vmatpush3.bf16.msra.mxu1 %v1048_v8 }
  0x13   : > { %v1012_v16 = vpack.c.bf16 %v319_v15, %v318_v13  ;;  %v1016_v22 = vpack.c.bf16 %v321_v18, %v320_v17  ;;  %v300_v23 = vld [vmem:[%s1200_s11] sm:$0xff]  ;;  %v322_v24 = vld [vmem:[%s1182_s4 + $0x30] sm:$0xff]  ;;  %v323_v25 = vld [vmem:[%s1182_s4 + $0x38] sm:$0xff]  ;;  %1053 = vmatprep.subr.bf16.mxu1 %v1052_v19 }
  0x14   : > { %1009 = vmatprep.subr.bf16.mxu0 %v1008_v14  ;;  %928 = vmatprep.mubr.f32.mxu0 %v300_v23  ;;  %v1020_v29 = vpack.c.bf16 %v323_v25, %v322_v24  ;;  %v324_v30 = vld [vmem:[%s1182_s4 + $0x40] sm:$0xff]  ;;  %v325_v31 = vld [vmem:[%s1182_s4 + $0x48] sm:$0xff]  ;;  %v326_v36 = vld [vmem:[%s1182_s4 + $0x50] sm:$0xff] }
  0x15   : > { %1011 = vmatpush3.bf16.msra.mxu0 %v1008_v14  ;;  %v1024_v35 = vpack.c.bf16 %v325_v31, %v324_v30  ;;  %v327_v37 = vld [vmem:[%s1182_s4 + $0x58] sm:$0xff]  ;;  %v328_v42 = vld [vmem:[%s1182_s4 + $0x60] sm:$0xff]  ;;  %v329_v43 = vld [vmem:[%s1182_s4 + $0x68] sm:$0xff] }
  0x16   : > { %1013 = vmatprep.subr.bf16.mxu0 %v1012_v16  ;;  %1055 = vmatpush3.bf16.msra.mxu1 %v1052_v19  ;;  %v1028_v41 = vpack.c.bf16 %v327_v37, %v326_v36  ;;  %v1032_v45 = vpack.c.bf16 %v329_v43, %v328_v42  ;;  %v330_v46 = vld [vmem:[%s1182_s4 + $0x70] sm:$0xff]  ;;  %v331_v47 = vld [vmem:[%s1182_s4 + $0x78] sm:$0xff]  ;;  %v301_v49 = vld [vmem:[%s1200_s11 + $0x8] sm:$0xff] }
  0x17   : > { %1057 = vmatprep.subr.bf16.mxu1 %v1056_v26  ;;  %v1036_v48 = vpack.c.bf16 %v331_v47, %v330_v46  ;;  %v302_v50 = vld [vmem:[%s1200_s11 + $0x10] sm:$0xff]  ;;  %v303_v51 = vld [vmem:[%s1200_s11 + $0x18] sm:$0xff]  ;;  %v304_v52 = vld [vmem:[%s1200_s11 + $0x20] sm:$0xff] }
  0x18   : > { %v305_v53 = vld [vmem:[%s1200_s11 + $0x28] sm:$0xff]  ;;  %v306_v54 = vld [vmem:[%s1200_s11 + $0x30] sm:$0xff]  ;;  %v307_v55 = vld [vmem:[%s1200_s11 + $0x38] sm:$0xff] }
  0x19   : > { %1015 = vmatpush3.bf16.msra.mxu0 %v1012_v16  ;;  %v308_v56 = vld [vmem:[%s1200_s11 + $0x40] sm:$0xff]  ;;  %v309_v57 = vld [vmem:[%s1200_s11 + $0x48] sm:$0xff]  ;;  %v310_v58 = vld [vmem:[%s1200_s11 + $0x50] sm:$0xff] }
  0x1a   : > { %1017 = vmatprep.subr.bf16.mxu0 %v1016_v22  ;;  %1059 = vmatpush3.bf16.msra.mxu1 %v1056_v26  ;;  %v311_v59 = vld [vmem:[%s1200_s11 + $0x58] sm:$0xff]  ;;  %v312_v60 = vld [vmem:[%s1200_s11 + $0x60] sm:$0xff]  ;;  %v313_v61 = vld [vmem:[%s1200_s11 + $0x68] sm:$0xff] }
  0x1b   : > { %1061 = vmatprep.subr.bf16.mxu1 %v1060_v32  ;;  %v314_v62 = vld [vmem:[%s1200_s11 + $0x70] sm:$0xff]  ;;  %v315_v63 = vld [vmem:[%s1200_s11 + $0x78] sm:$0xff] }
  0x1d   : > { %1019 = vmatpush3.bf16.msra.mxu0 %v1016_v22 }
  0x1e   : > { %1021 = vmatprep.subr.bf16.mxu0 %v1020_v29  ;;  %1063 = vmatpush3.bf16.msra.mxu1 %v1060_v32 }
  0x1f   : > { %1065 = vmatprep.subr.bf16.mxu1 %v1064_v38 }
  0x21   : > { %1023 = vmatpush3.bf16.msra.mxu0 %v1020_v29 }
  0x22   : > { %1025 = vmatprep.subr.bf16.mxu0 %v1024_v35  ;;  %1067 = vmatpush3.bf16.msra.mxu1 %v1064_v38 }
  0x23   : > { %1069 = vmatprep.subr.bf16.mxu1 %v1068_v44 }
  0x25   : > { %1027 = vmatpush3.bf16.msra.mxu0 %v1024_v35 }
  0x26   : > { %1029 = vmatprep.subr.bf16.mxu0 %v1028_v41  ;;  %1071 = vmatpush3.bf16.msra.mxu1 %v1068_v44 }
  0x29   : > { %1031 = vmatpush3.bf16.msra.mxu0 %v1028_v41 }
  0x2a   : > { %1033 = vmatprep.subr.bf16.mxu0 %v1032_v45 }
  0x2d   : > { %1035 = vmatpush3.bf16.msra.mxu0 %v1032_v45 }
  0x2e   : > { %1037 = vmatprep.subr.bf16.mxu0 %v1036_v48 }
  0x31   : > { %1039 = vmatpush3.bf16.msra.mxu0 %v1036_v48 }
  0x34   : > { %929 = vmatmul.mubr.f32.vlgmr.msra.gmra.mrb[0].mxu0 %v301_v49 }
  0x35   : > { %931 = vmatprep.mubr.f32.mxu0 %v302_v50 }
  0x38   : > { %932 = vmatmul.mubr.f32.gmra.mrb[2].mxu0 %v303_v51 }
  0x39   : > { %934 = vmatprep.mubr.f32.mxu0 %v304_v52 }
  0x3c   : > { %935 = vmatmul.mubr.f32.gmra.mrb[4].mxu0 %v305_v53 }
  0x3d   : > { %937 = vmatprep.mubr.f32.mxu0 %v306_v54 }
  0x40   : > { %938 = vmatmul.mubr.f32.gmra.mrb[6].mxu0 %v307_v55 }
  0x41   : > { %940 = vmatprep.mubr.f32.mxu0 %v308_v56 }
  0x44   : > { %941 = vmatmul.mubr.f32.gmra.mrb[8].mxu0 %v309_v57 }
  0x45   : > { %943 = vmatprep.mubr.f32.mxu0 %v310_v58 }
  0x48   : > { %944 = vmatmul.mubr.f32.gmra.mrb[10].mxu0 %v311_v59 }
  0x49   : > { %946 = vmatprep.mubr.f32.mxu0 %v312_v60 }
  0x4c   : > { %947 = vmatmul.mubr.f32.gmra.mrb[12].mxu0 %v313_v61 }
  0x4d   : > { %949 = vmatprep.mubr.f32.mxu0 %v314_v62 }
  0x50   : > { %950 = vmatmul.mubr.f32.gmra.mrb[14].mxu0 %v315_v63 }
 0x107   : > { %v930_v0 = vpop.f32.mrb[0].mxu0 }
 0x108   : > { %v398_v1 = vpop.f32.mrb[1].mxu0 }
 0x109   : > { %984 = vmatprep.mubr.f32.mxu1 %v398_v1 }
 0x10a   : > { %985 = vmatmul.mubr.f32.vlgmr.msra.gmra.mrb[0].mxu1 %v930_v0 }
 0x10b   : > { %v933_v2 = vpop.f32.mrb[2].mxu0 }
 0x10c   : > { %v408_v3 = vpop.f32.mrb[3].mxu0 }
 0x10d   : > { %987 = vmatprep.mubr.f32.mxu1 %v408_v3 }
 0x10e   : > { %988 = vmatmul.mubr.f32.gmra.mrb[2].mxu1 %v933_v2 }
 0x10f   : > { %v936_v4 = vpop.f32.mrb[4].mxu0 }
 0x110   : > { %v418_v5 = vpop.f32.mrb[5].mxu0 }
 0x111   : > { %990 = vmatprep.mubr.f32.mxu1 %v418_v5 }
 0x112   : > { %991 = vmatmul.mubr.f32.gmra.mrb[4].mxu1 %v936_v4 }
 0x113   : > { %v939_v6 = vpop.f32.mrb[6].mxu0 }
 0x114   : > { %v428_v7 = vpop.f32.mrb[7].mxu0 }
 0x115   : > { %993 = vmatprep.mubr.f32.mxu1 %v428_v7 }
 0x116   : > { %994 = vmatmul.mubr.f32.gmra.mrb[6].mxu1 %v939_v6 }
 0x117   : > { %v942_v8 = vpop.f32.mrb[8].mxu0 }
 0x118   : > { %v438_v9 = vpop.f32.mrb[9].mxu0 }
 0x119   : > { %996 = vmatprep.mubr.f32.mxu1 %v438_v9 }
 0x11a   : > { %997 = vmatmul.mubr.f32.gmra.mrb[8].mxu1 %v942_v8 }
 0x11b   : > { %v945_v10 = vpop.f32.mrb[10].mxu0 }
 0x11c   : > { %v448_v11 = vpop.f32.mrb[11].mxu0 }
 0x11d   : > { %999 = vmatprep.mubr.f32.mxu1 %v448_v11 }
 0x11e   : > { %1000 = vmatmul.mubr.f32.gmra.mrb[10].mxu1 %v945_v10 }
 0x11f   : > { %v948_v12 = vpop.f32.mrb[12].mxu0 }
 0x120   : > { %v458_v13 = vpop.f32.mrb[13].mxu0 }
 0x121   : > { %1002 = vmatprep.mubr.f32.mxu1 %v458_v13 }
 0x122   : > { %1003 = vmatmul.mubr.f32.gmra.mrb[12].mxu1 %v948_v12 }
 0x123   : > { %v951_v14 = vpop.f32.mrb[14].mxu0 }
 0x124   : > { %v468_v15 = vpop.f32.mrb[15].mxu0 }
 0x125   : > { %1005 = vmatprep.mubr.f32.mxu1 %v468_v15 }
 0x126   : > { %1006 = vmatmul.mubr.f32.gmra.mrb[14].mxu1 %v951_v14 }
 0x1dd   : > { %v986_v16 = vpop.f32.mrb[0].mxu1 }
 0x1de   : > { %690 = vst [vmem:[%s1256_s7 + $0x8] sm:$0xff] %v986_v16  ;;  %v610_v17 = vpop.f32.mrb[1].mxu1 }
 0x1df   : > { %689 = vst [vmem:[%s1256_s7] sm:$0xff] %v610_v17 }
 0x1e1   : > { %v989_v18 = vpop.f32.mrb[2].mxu1 }
 0x1e2   : > { %692 = vst [vmem:[%s1256_s7 + $0x18] sm:$0xff] %v989_v18  ;;  %v620_v19 = vpop.f32.mrb[3].mxu1 }
 0x1e3   : > { %691 = vst [vmem:[%s1256_s7 + $0x10] sm:$0xff] %v620_v19 }
 0x1e5   : > { %v992_v20 = vpop.f32.mrb[4].mxu1 }
 0x1e6   : > { %694 = vst [vmem:[%s1256_s7 + $0x28] sm:$0xff] %v992_v20  ;;  %v630_v21 = vpop.f32.mrb[5].mxu1 }
 0x1e7   : > { %693 = vst [vmem:[%s1256_s7 + $0x20] sm:$0xff] %v630_v21 }
 0x1e9   : > { %v995_v22 = vpop.f32.mrb[6].mxu1 }
 0x1ea   : > { %696 = vst [vmem:[%s1256_s7 + $0x38] sm:$0xff] %v995_v22  ;;  %v640_v23 = vpop.f32.mrb[7].mxu1 }
 0x1eb   : > { %695 = vst [vmem:[%s1256_s7 + $0x30] sm:$0xff] %v640_v23 }
 0x1ed   : > { %v998_v24 = vpop.f32.mrb[8].mxu1 }
 0x1ee   : > { %698 = vst [vmem:[%s1256_s7 + $0x48] sm:$0xff] %v998_v24  ;;  %v650_v25 = vpop.f32.mrb[9].mxu1 }
 0x1ef   : > { %697 = vst [vmem:[%s1256_s7 + $0x40] sm:$0xff] %v650_v25 }
 0x1f1   : > { %v1001_v26 = vpop.f32.mrb[10].mxu1 }
 0x1f2   : > { %700 = vst [vmem:[%s1256_s7 + $0x58] sm:$0xff] %v1001_v26  ;;  %v660_v27 = vpop.f32.mrb[11].mxu1 }
 0x1f3   : > { %699 = vst [vmem:[%s1256_s7 + $0x50] sm:$0xff] %v660_v27 }
 0x1f5   : > { %v1004_v28 = vpop.f32.mrb[12].mxu1 }
 0x1f6   : > { %702 = vst [vmem:[%s1256_s7 + $0x68] sm:$0xff] %v1004_v28  ;;  %v670_v29 = vpop.f32.mrb[13].mxu1 }
 0x1f7   : > { %701 = vst [vmem:[%s1256_s7 + $0x60] sm:$0xff] %v670_v29 }
 0x1f9   : > { %v1007_v30 = vpop.f32.mrb[14].mxu1 }
 0x1fa   : > { %704 = vst [vmem:[%s1256_s7 + $0x78] sm:$0xff] %v1007_v30  ;;  %v680_v31 = vpop.f32.mrb[15].mxu1 }
 0x1fb   : > { %703 = vst [vmem:[%s1256_s7 + $0x70] sm:$0xff] %v680_v31 }
 0x1fc PF: > { %s13_s14 = sadd.s32 1, %s1118_s14   ;;  %s1287_s12 = smov %s1114_s13 }
 0x1fd   : > { %p10_p5 = scmp.ge.s32.totalorder %s13_s14, 4   ;;  %s1288_s13 = smov %s1290_s15 }
 0x1ff   :  { %12 = sbr.rel (!%p10_p5) target bundleno = 2 (0x2), region = 73 }

</bundles_post_ra>
